<compile_context>
chip_gen: v7x
topology: tpu7x:2x2x1
jax: 0.10.0
libtpu: 0.0.40
codegen_flags: <defaults>
</compile_context>

<pallas_src>
import jax
import jax.numpy as jnp
from jax import lax
from jax.experimental import pallas as pl
from jax.experimental.pallas import tpu as pltpu


def _energy_kernel(enc_ref, wt_ref, dvb_ref, wv_ref, c_ref, o_ref):
    """enc_ref: (1, tile_s, E)  input dtype   wt_ref: (E, A)  input dtype
       dvb_ref: (1, 1, A) f32                 wv_ref: (A, 1) f32
       c_ref:   (1, 1) f32 in SMEM            o_ref:  (1, 1, tile_s) f32"""
    # Projection over the whole seq tile: one 2-D MXU matmul, f32 accumulate.
    t = jnp.dot(enc_ref[0], wt_ref[...], preferred_element_type=jnp.float32)
    # + (decoder projection + attention bias), broadcast over the tile rows.
    e = jnp.tanh(t + dvb_ref[0])                                    # (tile_s, A) f32
    # Weight-normed scoring projection: (tile_s, A) @ (A, 1) -> (tile_s, 1).
    s = jnp.dot(e, wv_ref[...], preferred_element_type=jnp.float32)
    # Lane-dense store: relayout the score column to a (1, tile_s) row (XLU is
    # otherwise idle here) and add the scalar (bias_v + r) read from SMEM.
    o_ref[0] = jnp.transpose(s) + c_ref[0, 0]


def energy_forward(encoder_outputs, decoder_h, w_enc, w_dec, b_att, w_v, b_v, r,
                   *, target_block_bytes=2 * 1024 * 1024):
    """encoder_outputs: (B, S, enc_dim)   decoder_h: (B, dec_dim)
       w_enc: (att_dim, enc_dim)  [self.W.weight]
       w_dec: (att_dim, dec_dim)  [self.V.weight]
       b_att: (att_dim,)          [self.b]
       w_v:   (att_dim,)          [effective weight-normed self.v.weight]
       b_v:   scalar              [self.v.bias]
       r:     (1,)                [self.r]
       Returns energies (B, S) — matches Energy.forward semantics."""
    B, S, E = encoder_outputs.shape
    A = w_enc.shape[0]
    in_dtype = encoder_outputs.dtype
    itemsize = jnp.dtype(in_dtype).itemsize

    # ---- seq tile selection -------------------------------------------------
    # Biggest tile whose encoder HBM block is ~target_block_bytes and whose f32
    # (tile_s, A) intermediate stays <= ~4 MiB.  Multiple of 128 so the
    # (1, 1, tile_s) lane-dense out block is legal, or the whole sequence if it
    # all fits in a single step (full-dim block, no divisibility constraint).
    tile_s = int(min(target_block_bytes // max(E * itemsize, 1),
                     (4 * 1024 * 1024) // max(A * 4, 1)))
    if tile_s >= S:
        tile_s = S
    else:
        tile_s = max(128, (tile_s // 128) * 128)
    grid_s = pl.cdiv(S, tile_s)

    # ---- small operands (precomputed once; resident in VMEM/SMEM) -----------
    wt = jnp.transpose(w_enc).astype(in_dtype)                       # (E, A)
    # Per-batch decoder projection + attention bias (tiny: B x A, f32).
    dvb = (decoder_h.astype(jnp.float32) @ w_dec.astype(jnp.float32).T
           + b_att.astype(jnp.float32))[:, None, :]                  # (B, 1, A)
    wv = w_v.astype(jnp.float32)[:, None]                            # (A, 1)
    c = jnp.asarray(b_v + r, jnp.float32).reshape(1, 1)              # (1, 1)

    cost = pl.CostEstimate(
        flops=int(2 * B * S * E * A + 2 * B * S * A),
        transcendentals=int(B * S * A),
        bytes_accessed=int(B * S * E * itemsize + B * S * 4
                           + E * A * itemsize + B * A * 4),
    )

    out = pl.pallas_call(
        _energy_kernel,
        out_shape=jax.ShapeDtypeStruct((B, 1, S), jnp.float32),
        grid=(B, grid_s),
        in_specs=[
            pl.BlockSpec((1, tile_s, E), lambda b, si: (b, si, 0)),  # enc tile (streamed)
            pl.BlockSpec((E, A), lambda b, si: (0, 0)),              # W^T (resident)
            pl.BlockSpec((1, 1, A), lambda b, si: (b, 0, 0)),        # dec proj + b
            pl.BlockSpec((A, 1), lambda b, si: (0, 0)),              # v_eff (resident)
            pl.BlockSpec(memory_space=pltpu.MemorySpace.SMEM),       # bias_v + r (scalar)
        ],
        out_specs=pl.BlockSpec((1, 1, tile_s), lambda b, si: (b, 0, si)),
        compiler_params=pltpu.CompilerParams(
            dimension_semantics=("parallel", "parallel")),
        cost_estimate=cost,
    )(encoder_outputs, wt, dvb, wv, c)

    return out[:, 0, :]


def _reference(encoder_outputs, decoder_h, w_enc, w_dec, b_att, w_v, b_v, r):
    """Pure-JAX reference reproducing Energy.forward."""
    hi = lax.Precision.HIGHEST
    proj = jnp.einsum("bse,ae->bsa", encoder_outputs, w_enc, precision=hi)
    dec = jnp.einsum("bd,ad->ba", decoder_h, w_dec, precision=hi)[:, None, :]
    e = jnp.tanh(proj + dec + b_att)
    return jnp.einsum("bsa,a->bs", e, w_v, precision=hi) + b_v + r


if __name__ == "__main__":
    # Small deterministic shapes implied by the forward pass.
    B, S, ENC, DEC, ATT = 2, 16, 32, 32, 32   # module requires dec_dim == att_dim
    key = jax.random.PRNGKey(0)
    k_enc, k_dec, k_w, k_v, k_b, k_vdir, k_vb = jax.random.split(key, 7)

    enc = jax.random.normal(k_enc, (B, S, ENC), jnp.float32)
    dec_h = jax.random.normal(k_dec, (B, DEC), jnp.float32)

    # nn.Linear(in, out, bias=False): uniform(-1/sqrt(in), 1/sqrt(in)).
    w_enc = jax.random.uniform(k_w, (ATT, ENC), jnp.float32, -1.0 / ENC ** 0.5, 1.0 / ENC ** 0.5)
    w_dec = jax.random.uniform(k_v, (ATT, DEC), jnp.float32, -1.0 / DEC ** 0.5, 1.0 / DEC ** 0.5)
    b_att = jax.random.normal(k_b, (ATT,), jnp.float32)              # self.b.normal_()

    # self.v = weight_norm(nn.Linear(dec_dim, 1)); weight_g = sqrt(1/att_dim).
    v_dir = jax.random.uniform(k_vdir, (ATT,), jnp.float32, -1.0 / ATT ** 0.5, 1.0 / ATT ** 0.5)
    g = jnp.sqrt(jnp.float32(1.0 / ATT))
    w_v = v_dir * (g / jnp.linalg.norm(v_dir))                       # effective weight-normed weight
    b_v = jax.random.uniform(k_vb, (), jnp.float32, -1.0 / ATT ** 0.5, 1.0 / ATT ** 0.5)
    r = jnp.full((1,), -4.0, jnp.float32)                            # init_r = -4

    out = energy_forward(enc, dec_h, w_enc, w_dec, b_att, w_v, b_v, r)
    out = jax.block_until_ready(out)

    ref = _reference(enc, dec_h, w_enc, w_dec, b_att, w_v, b_v, r)
    assert out.shape == (B, S) == ref.shape, (out.shape, ref.shape)
    # Kernel matmuls use default TPU precision (f32 accumulate); reference is
    # Precision.HIGHEST — tolerance documents the expected gap at these dims.
    max_err = float(jnp.max(jnp.abs(out - ref)))
    assert jnp.allclose(out, ref, atol=5e-4, rtol=5e-4), max_err

    print("KERNEL_OK")
</pallas_src>

<mosaic_0001>
module attributes {stable_mosaic.version = 11 : i64} {
  func.func @_energy_kernel(%arg0: i32, %arg1: i32, %arg2: memref<1x16x32xf32, #tpu.memory_space<vmem>>, %arg3: memref<32x32xf32, #tpu.memory_space<vmem>>, %arg4: memref<1x1x32xf32, #tpu.memory_space<vmem>>, %arg5: memref<32x1xf32, #tpu.memory_space<vmem>>, %arg6: memref<1x1xf32, #tpu.memory_space<smem>>, %arg7: memref<1x1x16xf32, #tpu.memory_space<vmem>>) attributes {dimension_semantics = [#tpu.dimension_semantics<parallel>, #tpu.dimension_semantics<parallel>], iteration_bounds = array<i64: 2, 1>, scalar_prefetch = 0 : i64, scratch_operands = 0 : i64, tpu.core_type = #tpu.core_type<tc>, window_params = [{transform_indices = @transform_0, window_bounds = array<i64: 1, 16, 32>}, {pipeline_mode = #tpu.pipeline_mode<synchronous>, transform_indices = @transform_1, window_bounds = array<i64: 32, 32>}, {transform_indices = @transform_2, window_bounds = array<i64: 1, 1, 32>}, {pipeline_mode = #tpu.pipeline_mode<synchronous>, transform_indices = @transform_3, window_bounds = array<i64: 32, 1>}, {transform_indices = @transform_4, window_bounds = array<i64: 1, 1>}, {transform_indices = @transform_5, window_bounds = array<i64: 1, 1, 16>}]} {
    %c0 = arith.constant 0 : index
    %c0_0 = arith.constant 0 : index
    %c0_1 = arith.constant 0 : index
    %0 = vector.load %arg2[%c0, %c0_0, %c0_1] : memref<1x16x32xf32, #tpu.memory_space<vmem>>, vector<1x16x32xf32>
    %1 = vector.shape_cast %0 : vector<1x16x32xf32> to vector<16x32xf32>
    %c0_2 = arith.constant 0 : index
    %c0_3 = arith.constant 0 : index
    %2 = vector.load %arg3[%c0_2, %c0_3] : memref<32x32xf32, #tpu.memory_space<vmem>>, vector<32x32xf32>
    %cst = arith.constant dense<0.000000e+00> : vector<16x32xf32>
    %3 = tpu.matmul %1, %2, %cst {dimension_numbers = #tpu.dot_dimension_numbers<[1], [0], [0], [1], [0, 0, 1, 1], [], []>} : vector<16x32xf32>, vector<32x32xf32>, vector<16x32xf32> -> vector<16x32xf32>
    %c0_4 = arith.constant 0 : index
    %c0_5 = arith.constant 0 : index
    %c0_6 = arith.constant 0 : index
    %4 = vector.load %arg4[%c0_4, %c0_5, %c0_6] : memref<1x1x32xf32, #tpu.memory_space<vmem>>, vector<1x1x32xf32>
    %5 = vector.shape_cast %4 : vector<1x1x32xf32> to vector<1x32xf32>
    %6 = vector.broadcast %5 : vector<1x32xf32> to vector<16x32xf32>
    %7 = arith.addf %3, %6 : vector<16x32xf32>
    %8 = math.tanh %7 : vector<16x32xf32>
    %c0_7 = arith.constant 0 : index
    %c0_8 = arith.constant 0 : index
    %9 = vector.load %arg5[%c0_7, %c0_8] : memref<32x1xf32, #tpu.memory_space<vmem>>, vector<32x1xf32>
    %cst_9 = arith.constant dense<0.000000e+00> : vector<16x1xf32>
    %10 = tpu.matmul %8, %9, %cst_9 {dimension_numbers = #tpu.dot_dimension_numbers<[1], [0], [0], [1], [0, 0, 1, 1], [], []>} : vector<16x32xf32>, vector<32x1xf32>, vector<16x1xf32> -> vector<16x1xf32>
    %11 = tpu.transpose %10, [1, 0] : vector<16x1xf32> -> vector<1x16xf32>
    %c0_10 = arith.constant 0 : index
    %c0_11 = arith.constant 0 : index
    %12 = memref.load %arg6[%c0_10, %c0_11] : memref<1x1xf32, #tpu.memory_space<smem>>
    %13 = vector.broadcast %12 : f32 to vector<1x16xf32>
    %14 = arith.addf %11, %13 : vector<1x16xf32>
    %c0_12 = arith.constant 0 : index
    %c0_13 = arith.constant 0 : index
    %c0_14 = arith.constant 0 : index
    %15 = vector.load %arg7[%c0_12, %c0_13, %c0_14] : memref<1x1x16xf32, #tpu.memory_space<vmem>>, vector<1x1x16xf32>
    %16 = vector.shape_cast %15 : vector<1x1x16xf32> to vector<1x16xf32>
    %17 = vector.shape_cast %14 : vector<1x16xf32> to vector<1x1x16xf32>
    tpu.vector_store %arg7[%c0_12, %c0_13, %c0_14], %17 {strides = array<i32>} : memref<1x1x16xf32, #tpu.memory_space<vmem>>, vector<1x1x16xf32>,
    return
  }
  func.func @transform_0(%arg0: i32, %arg1: i32) -> (i32, i32, i32) {
    %c0_i32 = arith.constant 0 : i32
    %c0_i32_0 = arith.constant 0 : i32
    return %arg0, %arg1, %c0_i32 : i32, i32, i32
  }
  func.func @transform_1(%arg0: i32, %arg1: i32) -> (i32, i32) {
    %c0_i32 = arith.constant 0 : i32
    %c0_i32_0 = arith.constant 0 : i32
    %c0_i32_1 = arith.constant 0 : i32
    return %c0_i32, %c0_i32_0 : i32, i32
  }
  func.func @transform_2(%arg0: i32, %arg1: i32) -> (i32, i32, i32) {
    %c0_i32 = arith.constant 0 : i32
    %c0_i32_0 = arith.constant 0 : i32
    %c0_i32_1 = arith.constant 0 : i32
    return %arg0, %c0_i32, %c0_i32_0 : i32, i32, i32
  }
  func.func @transform_3(%arg0: i32, %arg1: i32) -> (i32, i32) {
    %c0_i32 = arith.constant 0 : i32
    %c0_i32_0 = arith.constant 0 : i32
    %c0_i32_1 = arith.constant 0 : i32
    return %c0_i32, %c0_i32_0 : i32, i32
  }
  func.func @transform_4(%arg0: i32, %arg1: i32) -> (i32, i32) {
    %c0_i32 = arith.constant 0 : i32
    %c0_i32_0 = arith.constant 0 : i32
    %c0_i32_1 = arith.constant 0 : i32
    return %c0_i32, %c0_i32_0 : i32, i32
  }
  func.func @transform_5(%arg0: i32, %arg1: i32) -> (i32, i32, i32) {
    %c0_i32 = arith.constant 0 : i32
    %c0_i32_0 = arith.constant 0 : i32
    return %arg0, %c0_i32, %arg1 : i32, i32, i32
  }
}

</mosaic_0001>

<bundles_post_ra>
// kernel: tpu_custom_call.1
= control target key start
LH: loop header
LB: loop body
LE: loop exit
PB: predicated region body
PF: predicated region fallthrough
CT: control target
= control target key end

     0   :  { %s1069_s0 = inlined_call_operand.vmem [shape: f32[2,16,32], index: 0, kind: input, shape index: {}]   ;;  %s1070_s1 = inlined_call_operand.hbm [shape: f32[32,32], index: 1, kind: input, shape index: {}]   ;;  %s1071_s2 = inlined_call_operand.vmem [shape: f32[2,1,32], index: 2, kind: input, shape index: {}]   ;;  %s1072_s3 = inlined_call_operand.vmem [shape: f32[32,1], index: 3, kind: input, shape index: {}]   ;;  %s1073_s4 = inlined_call_operand.<no memory space> [shape: f32[1,1], index: 4, kind: input, shape index: {}]   ;;  %s1074_s5 = inlined_call_operand.hbm [shape: f32[2,1,16], index: 5, kind: output, shape index: {}]  }
   0x1   :  { %10 = sst [smem:[#allocation2]] %s1073_s4 }
   0x2   :  { %11 = vsyncpa [#allocation4], 0 }
   0x3   :  { %12 = vsyncpa [#allocation5], 0 }
   0x4   :  { %14 = vsyncpa [#allocation5 + $0x1], 0  ;;  %s896_s20 = smov 0   ;;  %s898_s21 = smov 0  }
   0x5   :  { %s900_s22 = smov 0   ;;  %s902_s23 = smov 0  }
   0x6   :  { %s904_s24 = smov 0   ;;  %s906_s25 = smov 0  }
   0x7 LB: > { %s606_s4 = sadd.s32 4294967295, %s857_s25   ;;  %s607_s26 = sadd.s32 4294967294, %s857_s25   ;;  %s857_s25 = sphi %s906_s25, %s20_s25   ;;  %s853_s24 = sphi %s904_s24, %s1092_s24   ;;  %s849_s23 = sphi %s902_s23, %s1091_s23   ;;  %s845_s22 = sphi %s900_s22, %s1090_s22   ;;  %s841_s21 = sphi %s898_s21, %s1089_s21   ;;  %s837_s20 = sphi %s896_s20, %s1088_s20  }
   0x8   : > { %s32_s27 = sadd.s32 1, %s853_s24  ;;  %s158_s28 = sadd.s32 1, %s845_s22 }
   0x9   : > { %p34_p0 = scmp.ge.s32.totalorder %s32_s27, 2  ;;  %p168_p1 = scmp.ne.s32.totalorder %s845_s22, %s841_s21 }
   0xa   : > { %p169_p2 = scmp.eq.s32.totalorder %s606_s4, 1  ;;  %p174_p3 = scmp.ne.s32.totalorder %s841_s21, %s837_s20 }
   0xb   : > { %s1094_s27 = smov (%p34_p0, %s32_s27), 0  ;;  %p175_p5 = scmp.eq.s32.totalorder %s607_s26, 1 }
   0xc   : > { %p936_p4 = por %p169_p2, %p168_p1  ;;  %s153_s30 = ssub.s32 %s853_s24, %s1094_s27 }
   0xd   : > { %p608_p6 = scmp.ge.s32.totalorder %s857_s25, 1  ;;  %p156_p7 = scmp.eq.s32.totalorder %s153_s30, 0 }
   0xe   : > { %s1079_s29 = scalar_select %p936_p4, 1, 0 }
   0xf   : > { %p943_p8 = por %p175_p5, %p174_p3  ;;  %p182_p9 = scmp.lt.s32.totalorder %s857_s25, 3 }
  0x10   : > { %s949_s7 = scalar_select %p156_p7, %s845_s22, %s158_s28  }
  0x11   : > { %s1080_s6 = scalar_select %p943_p8, 1, 0 }
  0x12   : > { %p951_p10 = pnand %p608_p6, %p182_p9  ;;  %p955_p11 = scmp.eq.s32.totalorder %s606_s4, 0 }
  0x13   : > { %s859_s10 = smov [#allocation3]   ;;  %s747_s15 = scalar_lea.hbm %s1070_s1, 512 }
  0x14   : > { %s1081_s8 = scalar_select %p951_p10, 1, 0 }
  0x15   : > { %s1082_s9 = scalar_select %p955_p11, 1, 0 }
  0x16   : > { %p680_p12 = pneg %p951_p10  ;;  %s194_s11 = sshll.u32 %s859_s10, 4  ;;  %s195_s11 = int_to_ptr.vmem [resolvable:$true] %s194_s11 }
  0x17   : > { %p748_p0 = scmp.ne.s32.totalorder %s1070_s1, %s747_s15  ;;  %p754_p5 = scmp.lt.u32.totalorder %s747_s15, %s1070_s1 }
  0x18   : > { %p963_p13 = pnand %p955_p11, %p680_p12 }
  0x1a   : > { %p749_p1 = pneg %p963_p13 }
  0x1c   : > { %p750_p2 = pnand %p749_p1, %p748_p0 }
  0x1e   : > { %p751_p3 = pneg %p750_p2 }
  0x20   : > { %p756_p6 = pnand %p754_p5, %p751_p3 }
  0x22   : > { %759 = shalt.err (!%p756_p6)
}
  0x23   : > { %s760_s4 = scalar_lea.vmem %s195_s11, 512  ;;  %p768_p8 = scmp.lt.s32.totalorder %s195_s11, %s195_s11 }
  0x24   : > { %p761_p7 = scmp.ne.s32.totalorder %s195_s11, %s760_s4  ;;  %p769_p4 = scmp.lt.s32.totalorder %s760_s4, %s760_s4 }
  0x26   : > { %p763_p9 = pnand %p761_p7, %p749_p1  ;;  %p770_p11 = por %p769_p4, %p768_p8 }
  0x28   : > { %p764_p12 = pneg %p763_p9 }
  0x2a   : > { %p771_p10 = pnand %p770_p11, %p764_p12 }
  0x2c   : > { %774 = shalt.err (!%p771_p10)
}
  0x2d   : > { %s860_s26 = smov 128   ;;  %s861_s28 = smov 8  }
  0x2e   : > { %683 = dma.hbm_to_vmem [thread:$0]  (!%p963_p13), %s1070_s1, 512, %s195_s11, [#allocation4], %s860_s26, %s860_s26, %s861_s28  }
  0x2f   : > { %p1084_p0 = scmp.ne.s32.totalorder %s1081_s8, 0 }
  0x30   : > { %p1085_p2 = scmp.ne.s32.totalorder (!%p1084_p0), %s1082_s9, 0 }
  0x31   : > { %235 = sbr.rel (%p1084_p0) target bundleno = 653 (0x28d), region = 40 }
  0x38   : > { %828 = dma.done.wait (%p1085_p2), [#allocation4], 512  }
  0x39   : > { %830 = vsyncadd (%p1085_p2), [#allocation4], 4294966784  ;;  %p270_p4 = scmp.lt.s32.totalorder %s849_s23, 1  ;;  %vm295_vm0 = vcmask 261120   ;;  %v284_v0 = vld [vmem:[#allocation3] sm:$0xff]  ;;  %v285_v1 = vld [vmem:[#allocation3 + $0x8] sm:$0xff] }
  0x3a   : > { %v286_v2 = vld [vmem:[#allocation3 + $0x10] sm:$0xff]  ;;  %v658_v3 = vpack.c.bf16 %v285_v1, %v284_v0  ;;  %v287_v4 = vld [vmem:[#allocation3 + $0x18] sm:$0xff]  ;;  %v379_v8 = vld [vmem:[%s1072_s3] sm:$0xff]  ;;  %s620_s14 = sshll.u32 %s849_s23, 4  ;;  %vm499_vm1 = vcmask 122880   ;;  %p1086_p10 = scmp.ne.s32.totalorder %s1079_s29, 0 }
  0x3b   : > { %s991_s13 = scalar_select %p270_p4, %s849_s23, 1  ;;  %v662_v6 = vpack.c.bf16 %v287_v4, %v286_v2  ;;  %v380_v9 = vld [vmem:[%s1072_s3 + $0x8] sm:$0xff]  ;;  %v381_v10 = vld [vmem:[%s1072_s3 + $0x10] sm:$0xff]  ;;  %v382_v12 = vld [vmem:[%s1072_s3 + $0x18] sm:$0xff] }
  0x3c   : > { %659 = vmatprep.subr.bf16.mxu0 %v658_v3  ;;  %v666_v11 = vpack.c.bf16 %v380_v9, %v379_v8  ;;  %v670_v13 = vpack.c.bf16 %v382_v12, %v381_v10  ;;  %s1022_s16 = scalar_lea.hbm %s1074_s5, %s620_s14  ;;  %s862_s23 = smov [#allocation6]  }
  0x3d   : > { %s623_s12 = sshll.u32 %s991_s13, 4  ;;  %661 = vmatpush3.bf16.msra.mxu0 %v658_v3  ;;  %s281_s10 = scalar_lea.vmem %s1071_s2, %s991_s13 }
  0x3e   : > { %s277_s11 = scalar_lea.vmem %s1069_s0, %s623_s12  ;;  %663 = vmatprep.subr.bf16.mxu0 %v662_v6  ;;  %667 = vmatprep.subr.bf16.mxu1 %v666_v11  ;;  %v615_v14 = vld [vmem:[%s281_s10] ss:$0 sm:$0xff]  ;;  %s496_s13 = sld [smem:[#allocation2]] }
  0x3f   : > { %v282_v5 = vld [vmem:[%s277_s11] sm:$0xff]  ;;  %v283_v7 = vld [vmem:[%s277_s11 + $0x8] sm:$0xff]  ;;  %669 = vmatpush3.bf16.msra.mxu1 %v666_v11  ;;  %s267_s12 = sand.u32 1, %s841_s21   ;;  %s779_s19 = sshll.u32 %s862_s23, 4  ;;  %s780_s19 = int_to_ptr.vmem [resolvable:$false] %s779_s19 }
  0x40   : > { %644 = vmatprep.mubr.msk.f32.mxu0 %vm295_vm0, %v282_v5  ;;  %671 = vmatprep.subr.bf16.mxu1 %v670_v13  ;;  %s268_s15 = scalar_lea.vmem [#allocation6], %s267_s12  ;;  %s502_s17 = scalar_lea.sflag [#allocation5], %s267_s12 }
  0x41   : > { %665 = vmatpush3.bf16.msra.mxu0 %v662_v6  ;;  %s515_s11 = sshll.u32 %s268_s15, 4  ;;  %s781_s4 = scalar_lea.vmem %s780_s19, 32  ;;  %s1024_s11 = int_to_ptr.vmem [resolvable:$true] %s515_s11 }
  0x42   : > { %s775_s18 = scalar_lea.vmem %s1024_s11, 16  ;;  %p782_p1 = scmp.lt.s32.totalorder %s1024_s11, %s780_s19 }
  0x43   : > { %673 = vmatpush3.bf16.msra.mxu1 %v670_v13  ;;  %p776_p8 = scmp.ne.s32.totalorder %s1024_s11, %s775_s18  ;;  %p783_p3 = scmp.lt.s32.totalorder %s781_s4, %s775_s18 }
  0x44   : > { %645 = vmatmul.mubr.msk.f32.vlgmr.msra.gmra.mrb[0].mxu0 %vm295_vm0, %v283_v7  ;;  %v497_v23 = vstv %s496_s13 }
  0x45   : > { %p777_p11 = pnand %p776_p8, %p1086_p10  ;;  %p784_p5 = por %p783_p3, %p782_p1 }
  0x47   : > { %p778_p13 = pneg %p777_p11 }
  0x49   : > { %p785_p6 = pnand %p784_p5, %p778_p13 }
 0x117   : > { %v646_v15 = vpop.f32.mrb[0].mxu0 }
 0x118   : > { %v374_v16 = vadd.f32 %v646_v15, %v615_v14  ;;  %v368_v17 = vpop.f32.mrb[1].mxu0 }
 0x119   : > { %v369_v18 = vadd.f32 %v615_v14, %v368_v17 }
 0x11b   : > { %743 = vtanh.f32 %v369_v18 }
 0x11c   : > { %745 = vtanh.f32 %v374_v16 }
 0x125   : > { %v744_v19 = vpop.eup %743 }
 0x126   : > { %v746_v20 = vpop.eup %745  ;;  %655 = vmatprep.mubr.msk.f32.mxu1 %vm295_vm0, %v744_v19 }
 0x127   : > { %656 = vmatmul.mubr.msk.f32.vlgmr.msra.gmra.mrb[0].mxu1 %vm295_vm0, %v746_v20 }
 0x1fa   : > { %v657_v21 = vpop.f32.mrb[0].mxu1 }
 0x1fb   : > { %v455_v22 = vpop.f32.mrb[1].mxu1 }
 0x1fc   : > { %464 = vxpose.xlu0.b32.start [1/2] (short) (narrow) %v455_v22, 8 }
 0x200   : > { %465 = vxpose.xlu0.b32.end [2/2] (short) (narrow) %v657_v21, 8 }
 0x27c   : > { %v480_v24 = vpop.trf.xlu0 }
 0x27d   : > { %v498_v25 = vadd.f32 %v497_v23, %v480_v24 }
 0x27f   : > { %500 = vst.msk [vmem:[%s268_s15] sm:$0x1] %vm499_vm1, %v498_v25 }
 0x280   : > { %788 = shalt.err (!%p785_p6)
}
 0x281   : > { %s789_s26 = scalar_lea.hbm %s1022_s16, 16  ;;  %s793_s10 = scalar_lea.hbm %s1074_s5, 32 }
 0x282   : > { %p790_p7 = scmp.ne.s32.totalorder %s1022_s16, %s789_s26  ;;  %p794_p0 = scmp.lt.u32.totalorder %s1022_s16, %s1074_s5 }
 0x283   : > { %p795_p2 = scmp.lt.u32.totalorder %s793_s10, %s789_s26  ;;  %p797_p8 = scmp.lt.u32.totalorder %s789_s26, %s1022_s16 }
 0x284   : > { %p791_p9 = pnand %p790_p7, %p1086_p10 }
 0x285   : > { %p796_p4 = por %p795_p2, %p794_p0 }
 0x286   : > { %p792_p12 = pneg %p791_p9 }
 0x287   : > { %p798_p11 = por %p797_p8, %p796_p4 }
 0x289   : > { %p799_p13 = pnand %p798_p11, %p792_p12 }
 0x28b   : > { %802 = shalt.err (!%p799_p13)
}
 0x28c   : > { %678 = dma.vmem_to_hbm [thread:$0]  (%p1086_p10), %s1024_s11, 16, %s1022_s16, %s502_s17  }
 0x28d PF: > { %p690_p1 = scmp.ge.s32.totalorder %s857_s25, 2  ;;  %s527_s14 = sand.u32 1, %s837_s20  }
 0x28e   : > { %p1087_p3 = scmp.ne.s32.totalorder %s1080_s6, 0  ;;  %s528_s15 = scalar_lea.sflag [#allocation5], %s527_s14 }
 0x290   : > { %p685_p5 = pnand %p690_p1, %p1087_p3 }
 0x292   : > { %832 = dma.done.wait (!%p685_p5), %s528_s15, 16  }
 0x293   : > { %834 = vsyncadd (!%p685_p5), %s528_s15, 4294967280  ;;  %s20_s25 = sadd.s32 1, %s857_s25   ;;  %s1088_s20 = smov %s841_s21 }
 0x294   : > { %p17_p6 = scmp.ge.s32.totalorder %s20_s25, 4   ;;  %s1089_s21 = smov %s845_s22 }
 0x295   : > { %s1090_s22 = smov %s949_s7  ;;  %s1091_s23 = smov %s853_s24 }
 0x296   : > { %s1092_s24 = smov %s1094_s27  ;;  %19 = sbr.rel (!%p17_p6) target bundleno = 7 (0x7), region = 83 }
 0x29d   :  { %532 = vsyncpa [#allocation4], 1 }
 0x29e   :  { %534 = vsyncpa [#allocation4 + $0x1], 1 }
 0x29f   :  { %535 = vsyncpa [#allocation5], 1 }
 0x2a0   :  { %537 = vsyncpa [#allocation5 + $0x1], 1 }

</bundles_post_ra>
